<compile_context>
chip_gen: v5e
topology: v5e:2x2
jax: 0.10.0
libtpu: 0.0.40
codegen_flags: <defaults>
</compile_context>

<pallas_src>
import functools
import math

import jax
import jax.numpy as jnp
import numpy as np
from jax import lax
from jax.experimental import pallas as pl
from jax.experimental.pallas import tpu as pltpu


def _mha_kernel(lens_ref,
                q_ref, k_ref, v_ref,
                wq_ref, bq_ref, wk_ref, bk_ref, wv_ref, bv_ref,
                wo_ref, bo_ref,
                cv_ref, *aw_refs,
                n_heads, d_k, inv_scale, need_aw):
    """One batch element; all heads fused.

    lens_ref: (B,) int32 in SMEM (scalar prefetch) -- valid key length per batch.
    q_ref:    (1, qlen, qdim)     k_ref/v_ref: (1, klen, kdim)
    wq_ref:   (qdim, adim)  bq_ref: (1, adim)   (same pattern for k / v)
    wo_ref:   (adim, odim)  bo_ref: (1, odim)
    cv_ref:   (1, qlen, odim)
    aw_refs:  optionally one ref of shape (1, n_heads, qlen, klen)
    """
    b = pl.program_id(0)

    q = q_ref[0]                      # (qlen, qdim)
    k = k_ref[0]                      # (klen, kdim)
    v = v_ref[0]                      # (klen, kdim)
    qlen = q.shape[0]
    klen = k.shape[0]

    # Full-width projections: one wide MXU matmul each (not n_heads narrow ones).
    qp = jnp.dot(q, wq_ref[...], preferred_element_type=jnp.float32) + bq_ref[...]
    kp = jnp.dot(k, wk_ref[...], preferred_element_type=jnp.float32) + bk_ref[...]
    vp = jnp.dot(v, wv_ref[...], preferred_element_type=jnp.float32) + bv_ref[...]

    # Length mask built in-kernel (replaces the streamed (B,qlen,klen) mask).
    kidx = lax.broadcasted_iota(jnp.int32, (qlen, klen), 1)
    valid = kidx < lens_ref[b]
    neg_inf = jnp.finfo(jnp.float32).min

    cv_heads = []
    for h in range(n_heads):          # static unroll over heads
        lo, hi = h * d_k, (h + 1) * d_k
        qh = qp[:, lo:hi]             # (qlen, d_k)
        kh = kp[:, lo:hi]             # (klen, d_k)
        vh = vp[:, lo:hi]             # (klen, d_k)

        # scores: contract over d_k without materializing kh.T
        e = lax.dot_general(qh, kh, (((1,), (1,)), ((), ())),
                            preferred_element_type=jnp.float32) * inv_scale
        e = jnp.where(valid, e, neg_inf)

        # softmax over klen (dim=2 in the PyTorch code)
        m = jnp.max(e, axis=-1, keepdims=True)
        p = jnp.exp(e - m)
        aw_h = p * pl.reciprocal(jnp.sum(p, axis=-1, keepdims=True), approx=True)

        if need_aw:
            aw_refs[0][0, h] = aw_h   # (B, H, qlen, klen) layout, per-head tile

        cv_heads.append(jnp.dot(aw_h, vh, preferred_element_type=jnp.float32))

    # Concatenate heads -> (qlen, adim); single wide output-projection matmul.
    cv_cat = jnp.concatenate(cv_heads, axis=-1)
    cv_ref[0] = (jnp.dot(cv_cat, wo_ref[...], preferred_element_type=jnp.float32)
                 + bo_ref[...])


def multihead_attention(key, value, query, key_lens, params, *, n_heads,
                        need_aw=True):
    """Forward pass matching MultiheadAttentionMechanism (scaled_dot, eval).

    key/value: [B, klen, kdim], query: [B, qlen, qdim],
    key_lens:  [B] int32 valid key lengths (length-style mask).
    Returns (cv [B, qlen, odim], aw [B, H, qlen, klen] or None).
    """
    B, klen, kdim = key.shape
    _, qlen, qdim = query.shape
    wq, bq, wk, bk, wv, bv, wo, bo = params
    adim = wq.shape[1]
    odim = wo.shape[1]
    d_k = adim // n_heads
    inv_scale = 1.0 / math.sqrt(d_k)

    kernel = functools.partial(_mha_kernel, n_heads=n_heads, d_k=d_k,
                               inv_scale=inv_scale, need_aw=need_aw)

    in_specs = [
        pl.BlockSpec((1, qlen, qdim), lambda b, lens: (b, 0, 0)),   # query
        pl.BlockSpec((1, klen, kdim), lambda b, lens: (b, 0, 0)),   # key
        pl.BlockSpec((1, klen, kdim), lambda b, lens: (b, 0, 0)),   # value
        # Weights/biases: full blocks, constant index_map -> fetched once,
        # resident in VMEM for the entire grid.
        pl.BlockSpec((qdim, adim), lambda b, lens: (0, 0)),         # wq
        pl.BlockSpec((1, adim),    lambda b, lens: (0, 0)),         # bq
        pl.BlockSpec((kdim, adim), lambda b, lens: (0, 0)),         # wk
        pl.BlockSpec((1, adim),    lambda b, lens: (0, 0)),         # bk
        pl.BlockSpec((kdim, adim), lambda b, lens: (0, 0)),         # wv
        pl.BlockSpec((1, adim),    lambda b, lens: (0, 0)),         # bv
        pl.BlockSpec((adim, odim), lambda b, lens: (0, 0)),         # wo
        pl.BlockSpec((1, odim),    lambda b, lens: (0, 0)),         # bo
    ]
    out_specs = [pl.BlockSpec((1, qlen, odim), lambda b, lens: (b, 0, 0))]
    out_shape = [jax.ShapeDtypeStruct((B, qlen, odim), jnp.float32)]
    if need_aw:
        out_specs.append(
            pl.BlockSpec((1, n_heads, qlen, klen), lambda b, lens: (b, 0, 0, 0)))
        out_shape.append(
            jax.ShapeDtypeStruct((B, n_heads, qlen, klen), jnp.float32))

    fn = pl.pallas_call(
        kernel,
        out_shape=out_shape,
        grid_spec=pltpu.PrefetchScalarGridSpec(
            num_scalar_prefetch=1,
            grid=(B,),
            in_specs=in_specs,
            out_specs=out_specs,
        ),
        compiler_params=pltpu.CompilerParams(
            dimension_semantics=("parallel",)),
    )
    outs = fn(key_lens, query, key, value, wq, bq, wk, bk, wv, bv, wo, bo)
    if need_aw:
        return outs[0], outs[1]
    return outs[0], None


def _init_params(rng, kdim, qdim, adim, odim):
    """Deterministic synthetic parameters, stored pre-transposed (in, out)."""
    ks = jax.random.split(rng, 8)

    def lin(k, fan_in, fan_out):
        lim = 1.0 / np.sqrt(fan_in)
        return jax.random.uniform(k, (fan_in, fan_out), jnp.float32, -lim, lim)

    wq = lin(ks[0], qdim, adim)
    wk = lin(ks[1], kdim, adim)
    wv = lin(ks[2], kdim, adim)
    wo = lin(ks[3], adim, odim)
    bq = jax.random.uniform(ks[4], (1, adim), jnp.float32, -0.1, 0.1)
    bk = jax.random.uniform(ks[5], (1, adim), jnp.float32, -0.1, 0.1)
    bv = jax.random.uniform(ks[6], (1, adim), jnp.float32, -0.1, 0.1)
    bo = jax.random.uniform(ks[7], (1, odim), jnp.float32, -0.1, 0.1)
    return (wq, bq, wk, bk, wv, bv, wo, bo)


def _ref_forward(key, value, query, key_lens, params, n_heads):
    """Pure-JAX reference mirroring the PyTorch forward (eval mode)."""
    wq, bq, wk, bk, wv, bv, wo, bo = params
    B, klen, _ = key.shape
    qlen = query.shape[1]
    adim = wq.shape[1]
    d_k = adim // n_heads

    q = (query @ wq + bq).reshape(B, qlen, n_heads, d_k)
    k = (key @ wk + bk).reshape(B, klen, n_heads, d_k)
    v = (value @ wv + bv).reshape(B, klen, n_heads, d_k)

    e = jnp.einsum('bihd,bjhd->bijh', q, k) / math.sqrt(d_k)     # (B,q,k,H)
    mask = jnp.arange(klen)[None, :] < key_lens[:, None]          # (B, klen)
    neg_inf = jnp.finfo(jnp.float32).min
    e = jnp.where(mask[:, None, :, None], e, neg_inf)
    aw = jax.nn.softmax(e, axis=2)                                # (B,q,k,H)
    cv = jnp.einsum('bijh,bjhd->bihd', aw, v).reshape(B, qlen, adim)
    cv = cv @ wo + bo
    aw_out = jnp.transpose(aw, (0, 3, 1, 2))                      # (B,H,q,k)
    return cv, aw_out


if __name__ == "__main__":
    B, qlen, klen = 2, 8, 16
    kdim, qdim, adim, odim, n_heads = 32, 32, 32, 32, 4

    rng = jax.random.PRNGKey(0)
    r_k, r_v, r_q, r_p = jax.random.split(rng, 4)
    key = jax.random.normal(r_k, (B, klen, kdim), jnp.float32)
    value = jax.random.normal(r_v, (B, klen, kdim), jnp.float32)
    query = jax.random.normal(r_q, (B, qlen, qdim), jnp.float32)

    # Length-style mask: batch 0 sees all keys, batch 1 sees first 10 keys.
    key_lens = jnp.array([klen, 10], dtype=jnp.int32)

    params = _init_params(r_p, kdim, qdim, adim, odim)

    cv, aw = multihead_attention(key, value, query, key_lens, params,
                                 n_heads=n_heads, need_aw=True)
    jax.block_until_ready((cv, aw))

    cv_ref, aw_ref = _ref_forward(key, value, query, key_lens, params, n_heads)
    # Tolerance loosened vs. 2e-5 because the softmax denominator now uses the
    # EUP approximate reciprocal (pl.reciprocal(approx=True)).
    np.testing.assert_allclose(np.asarray(cv), np.asarray(cv_ref),
                               rtol=2e-3, atol=2e-3)
    np.testing.assert_allclose(np.asarray(aw), np.asarray(aw_ref),
                               rtol=2e-3, atol=2e-3)

    print("KERNEL_OK")
</pallas_src>

<mosaic_0001>
module attributes {stable_mosaic.version = 11 : i64} {
  func.func @_mha_kernel(%arg0: i32, %arg1: memref<2xi32, #tpu.memory_space<smem>>, %arg2: memref<1x8x32xf32, #tpu.memory_space<vmem>>, %arg3: memref<1x16x32xf32, #tpu.memory_space<vmem>>, %arg4: memref<1x16x32xf32, #tpu.memory_space<vmem>>, %arg5: memref<32x32xf32, #tpu.memory_space<vmem>>, %arg6: memref<1x32xf32, #tpu.memory_space<vmem>>, %arg7: memref<32x32xf32, #tpu.memory_space<vmem>>, %arg8: memref<1x32xf32, #tpu.memory_space<vmem>>, %arg9: memref<32x32xf32, #tpu.memory_space<vmem>>, %arg10: memref<1x32xf32, #tpu.memory_space<vmem>>, %arg11: memref<32x32xf32, #tpu.memory_space<vmem>>, %arg12: memref<1x32xf32, #tpu.memory_space<vmem>>, %arg13: memref<1x8x32xf32, #tpu.memory_space<vmem>>, %arg14: memref<1x4x8x16xf32, #tpu.memory_space<vmem>>) attributes {dimension_semantics = [#tpu.dimension_semantics<parallel>], iteration_bounds = array<i64: 2>, scalar_prefetch = 1 : i64, scratch_operands = 0 : i64, tpu.core_type = #tpu.core_type<tc>, window_params = [{transform_indices = @transform_0, window_bounds = array<i64: 1, 8, 32>}, {transform_indices = @transform_1, window_bounds = array<i64: 1, 16, 32>}, {transform_indices = @transform_2, window_bounds = array<i64: 1, 16, 32>}, {pipeline_mode = #tpu.pipeline_mode<synchronous>, transform_indices = @transform_3, window_bounds = array<i64: 32, 32>}, {pipeline_mode = #tpu.pipeline_mode<synchronous>, transform_indices = @transform_4, window_bounds = array<i64: 1, 32>}, {pipeline_mode = #tpu.pipeline_mode<synchronous>, transform_indices = @transform_5, window_bounds = array<i64: 32, 32>}, {pipeline_mode = #tpu.pipeline_mode<synchronous>, transform_indices = @transform_6, window_bounds = array<i64: 1, 32>}, {pipeline_mode = #tpu.pipeline_mode<synchronous>, transform_indices = @transform_7, window_bounds = array<i64: 32, 32>}, {pipeline_mode = #tpu.pipeline_mode<synchronous>, transform_indices = @transform_8, window_bounds = array<i64: 1, 32>}, {pipeline_mode = #tpu.pipeline_mode<synchronous>, transform_indices = @transform_9, window_bounds = array<i64: 32, 32>}, {pipeline_mode = #tpu.pipeline_mode<synchronous>, transform_indices = @transform_10, window_bounds = array<i64: 1, 32>}, {transform_indices = @transform_11, window_bounds = array<i64: 1, 8, 32>}, {transform_indices = @transform_12, window_bounds = array<i64: 1, 4, 8, 16>}]} {
    %c0 = arith.constant 0 : index
    %c0_0 = arith.constant 0 : index
    %c0_1 = arith.constant 0 : index
    %0 = vector.load %arg2[%c0, %c0_0, %c0_1] : memref<1x8x32xf32, #tpu.memory_space<vmem>>, vector<1x8x32xf32>
    %1 = vector.shape_cast %0 : vector<1x8x32xf32> to vector<8x32xf32>
    %c0_2 = arith.constant 0 : index
    %c0_3 = arith.constant 0 : index
    %c0_4 = arith.constant 0 : index
    %2 = vector.load %arg3[%c0_2, %c0_3, %c0_4] : memref<1x16x32xf32, #tpu.memory_space<vmem>>, vector<1x16x32xf32>
    %3 = vector.shape_cast %2 : vector<1x16x32xf32> to vector<16x32xf32>
    %c0_5 = arith.constant 0 : index
    %c0_6 = arith.constant 0 : index
    %c0_7 = arith.constant 0 : index
    %4 = vector.load %arg4[%c0_5, %c0_6, %c0_7] : memref<1x16x32xf32, #tpu.memory_space<vmem>>, vector<1x16x32xf32>
    %5 = vector.shape_cast %4 : vector<1x16x32xf32> to vector<16x32xf32>
    %c0_8 = arith.constant 0 : index
    %c0_9 = arith.constant 0 : index
    %6 = vector.load %arg5[%c0_8, %c0_9] : memref<32x32xf32, #tpu.memory_space<vmem>>, vector<32x32xf32>
    %cst = arith.constant dense<0.000000e+00> : vector<8x32xf32>
    %7 = tpu.matmul %1, %6, %cst {dimension_numbers = #tpu.dot_dimension_numbers<[1], [0], [0], [1], [0, 0, 1, 1], [], []>} : vector<8x32xf32>, vector<32x32xf32>, vector<8x32xf32> -> vector<8x32xf32>
    %c0_10 = arith.constant 0 : index
    %c0_11 = arith.constant 0 : index
    %8 = vector.load %arg6[%c0_10, %c0_11] : memref<1x32xf32, #tpu.memory_space<vmem>>, vector<1x32xf32>
    %9 = vector.broadcast %8 : vector<1x32xf32> to vector<8x32xf32>
    %10 = arith.addf %7, %9 : vector<8x32xf32>
    %c0_12 = arith.constant 0 : index
    %c0_13 = arith.constant 0 : index
    %11 = vector.load %arg7[%c0_12, %c0_13] : memref<32x32xf32, #tpu.memory_space<vmem>>, vector<32x32xf32>
    %cst_14 = arith.constant dense<0.000000e+00> : vector<16x32xf32>
    %12 = tpu.matmul %3, %11, %cst_14 {dimension_numbers = #tpu.dot_dimension_numbers<[1], [0], [0], [1], [0, 0, 1, 1], [], []>} : vector<16x32xf32>, vector<32x32xf32>, vector<16x32xf32> -> vector<16x32xf32>
    %c0_15 = arith.constant 0 : index
    %c0_16 = arith.constant 0 : index
    %13 = vector.load %arg8[%c0_15, %c0_16] : memref<1x32xf32, #tpu.memory_space<vmem>>, vector<1x32xf32>
    %14 = vector.broadcast %13 : vector<1x32xf32> to vector<16x32xf32>
    %15 = arith.addf %12, %14 : vector<16x32xf32>
    %c0_17 = arith.constant 0 : index
    %c0_18 = arith.constant 0 : index
    %16 = vector.load %arg9[%c0_17, %c0_18] : memref<32x32xf32, #tpu.memory_space<vmem>>, vector<32x32xf32>
    %cst_19 = arith.constant dense<0.000000e+00> : vector<16x32xf32>
    %17 = tpu.matmul %5, %16, %cst_19 {dimension_numbers = #tpu.dot_dimension_numbers<[1], [0], [0], [1], [0, 0, 1, 1], [], []>} : vector<16x32xf32>, vector<32x32xf32>, vector<16x32xf32> -> vector<16x32xf32>
    %c0_20 = arith.constant 0 : index
    %c0_21 = arith.constant 0 : index
    %18 = vector.load %arg10[%c0_20, %c0_21] : memref<1x32xf32, #tpu.memory_space<vmem>>, vector<1x32xf32>
    %19 = vector.broadcast %18 : vector<1x32xf32> to vector<16x32xf32>
    %20 = arith.addf %17, %19 : vector<16x32xf32>
    %21 = tpu.iota {dimensions = array<i32: 1>} : vector<8x16xi32>
    %22 = arith.index_cast %arg0 : i32 to index
    %23 = memref.load %arg1[%22] : memref<2xi32, #tpu.memory_space<smem>>
    %24 = vector.broadcast %23 : i32 to vector<8x16xi32>
    %25 = arith.cmpi slt, %21, %24 : vector<8x16xi32>
    %26 = vector.extract_strided_slice %10 {offsets = [0, 0], sizes = [8, 8], strides = [1, 1]} : vector<8x32xf32> to vector<8x8xf32>
    %27 = vector.extract_strided_slice %15 {offsets = [0, 0], sizes = [16, 8], strides = [1, 1]} : vector<16x32xf32> to vector<16x8xf32>
    %28 = vector.extract_strided_slice %20 {offsets = [0, 0], sizes = [16, 8], strides = [1, 1]} : vector<16x32xf32> to vector<16x8xf32>
    %cst_22 = arith.constant dense<0.000000e+00> : vector<8x16xf32>
    %29 = tpu.matmul %26, %27, %cst_22 {dimension_numbers = #tpu.dot_dimension_numbers<[1], [1], [0], [0], [0, 0, 1, 0], [], []>} : vector<8x8xf32>, vector<16x8xf32>, vector<8x16xf32> -> vector<8x16xf32>
    %cst_23 = arith.constant 0.353553385 : f32
    %30 = vector.broadcast %cst_23 : f32 to vector<8x16xf32>
    %31 = arith.mulf %29, %30 : vector<8x16xf32>
    %cst_24 = arith.constant -3.40282347E+38 : f32
    %32 = vector.broadcast %cst_24 : f32 to vector<8x16xf32>
    %33 = arith.select %25, %31, %32 : vector<8x16xi1>, vector<8x16xf32>
    %cst_25 = arith.constant dense<0xFF800000> : vector<8xf32>
    %34 = vector.multi_reduction <maximumf>, %33, %cst_25 [1] : vector<8x16xf32> to vector<8xf32>
    %35 = vector.shape_cast %34 : vector<8xf32> to vector<8x1xf32>
    %36 = vector.broadcast %35 : vector<8x1xf32> to vector<8x16xf32>
    %37 = arith.subf %33, %36 : vector<8x16xf32>
    %38 = math.exp %37 : vector<8x16xf32>
    %cst_26 = arith.constant dense<0.000000e+00> : vector<8xf32>
    %39 = vector.multi_reduction <add>, %38, %cst_26 [1] : vector<8x16xf32> to vector<8xf32>
    %40 = vector.shape_cast %39 : vector<8xf32> to vector<8x1xf32>
    %41 = tpu.reciprocal %40 {approx = true} : vector<8x1xf32> -> vector<8x1xf32>
    %42 = vector.broadcast %41 : vector<8x1xf32> to vector<8x16xf32>
    %43 = arith.mulf %38, %42 : vector<8x16xf32>
    %c0_27 = arith.constant 0 : index
    %c0_28 = arith.constant 0 : index
    %c0_29 = arith.constant 0 : index
    %c0_30 = arith.constant 0 : index
    %44 = vector.load %arg14[%c0_27, %c0_28, %c0_29, %c0_30] : memref<1x4x8x16xf32, #tpu.memory_space<vmem>>, vector<1x1x8x16xf32>
    %45 = vector.shape_cast %44 : vector<1x1x8x16xf32> to vector<8x16xf32>
    %46 = vector.shape_cast %43 : vector<8x16xf32> to vector<1x1x8x16xf32>
    tpu.vector_store %arg14[%c0_27, %c0_28, %c0_29, %c0_30], %46 {strides = array<i32>} : memref<1x4x8x16xf32, #tpu.memory_space<vmem>>, vector<1x1x8x16xf32>,
    %cst_31 = arith.constant dense<0.000000e+00> : vector<8x8xf32>
    %47 = tpu.matmul %43, %28, %cst_31 {dimension_numbers = #tpu.dot_dimension_numbers<[1], [0], [0], [1], [0, 0, 1, 1], [], []>} : vector<8x16xf32>, vector<16x8xf32>, vector<8x8xf32> -> vector<8x8xf32>
    %48 = vector.extract_strided_slice %10 {offsets = [0, 8], sizes = [8, 8], strides = [1, 1]} : vector<8x32xf32> to vector<8x8xf32>
    %49 = vector.extract_strided_slice %15 {offsets = [0, 8], sizes = [16, 8], strides = [1, 1]} : vector<16x32xf32> to vector<16x8xf32>
    %50 = vector.extract_strided_slice %20 {offsets = [0, 8], sizes = [16, 8], strides = [1, 1]} : vector<16x32xf32> to vector<16x8xf32>
    %cst_32 = arith.constant dense<0.000000e+00> : vector<8x16xf32>
    %51 = tpu.matmul %48, %49, %cst_32 {dimension_numbers = #tpu.dot_dimension_numbers<[1], [1], [0], [0], [0, 0, 1, 0], [], []>} : vector<8x8xf32>, vector<16x8xf32>, vector<8x16xf32> -> vector<8x16xf32>
    %cst_33 = arith.constant 0.353553385 : f32
    %52 = vector.broadcast %cst_33 : f32 to vector<8x16xf32>
    %53 = arith.mulf %51, %52 : vector<8x16xf32>
    %cst_34 = arith.constant -3.40282347E+38 : f32
    %54 = vector.broadcast %cst_34 : f32 to vector<8x16xf32>
    %55 = arith.select %25, %53, %54 : vector<8x16xi1>, vector<8x16xf32>
    %cst_35 = arith.constant dense<0xFF800000> : vector<8xf32>
    %56 = vector.multi_reduction <maximumf>, %55, %cst_35 [1] : vector<8x16xf32> to vector<8xf32>
    %57 = vector.shape_cast %56 : vector<8xf32> to vector<8x1xf32>
    %58 = vector.broadcast %57 : vector<8x1xf32> to vector<8x16xf32>
    %59 = arith.subf %55, %58 : vector<8x16xf32>
    %60 = math.exp %59 : vector<8x16xf32>
    %cst_36 = arith.constant dense<0.000000e+00> : vector<8xf32>
    %61 = vector.multi_reduction <add>, %60, %cst_36 [1] : vector<8x16xf32> to vector<8xf32>
    %62 = vector.shape_cast %61 : vector<8xf32> to vector<8x1xf32>
    %63 = tpu.reciprocal %62 {approx = true} : vector<8x1xf32> -> vector<8x1xf32>
    %64 = vector.broadcast %63 : vector<8x1xf32> to vector<8x16xf32>
    %65 = arith.mulf %60, %64 : vector<8x16xf32>
    %c0_37 = arith.constant 0 : index
    %c1 = arith.constant 1 : index
    %c0_38 = arith.constant 0 : index
    %c0_39 = arith.constant 0 : index
    %66 = vector.load %arg14[%c0_37, %c1, %c0_38, %c0_39] : memref<1x4x8x16xf32, #tpu.memory_space<vmem>>, vector<1x1x8x16xf32>
    %67 = vector.shape_cast %66 : vector<1x1x8x16xf32> to vector<8x16xf32>
    %68 = vector.shape_cast %65 : vector<8x16xf32> to vector<1x1x8x16xf32>
    tpu.vector_store %arg14[%c0_37, %c1, %c0_38, %c0_39], %68 {strides = array<i32>} : memref<1x4x8x16xf32, #tpu.memory_space<vmem>>, vector<1x1x8x16xf32>,
    %cst_40 = arith.constant dense<0.000000e+00> : vector<8x8xf32>
    %69 = tpu.matmul %65, %50, %cst_40 {dimension_numbers = #tpu.dot_dimension_numbers<[1], [0], [0], [1], [0, 0, 1, 1], [], []>} : vector<8x16xf32>, vector<16x8xf32>, vector<8x8xf32> -> vector<8x8xf32>
    %70 = vector.extract_strided_slice %10 {offsets = [0, 16], sizes = [8, 8], strides = [1, 1]} : vector<8x32xf32> to vector<8x8xf32>
    %71 = vector.extract_strided_slice %15 {offsets = [0, 16], sizes = [16, 8], strides = [1, 1]} : vector<16x32xf32> to vector<16x8xf32>
    %72 = vector.extract_strided_slice %20 {offsets = [0, 16], sizes = [16, 8], strides = [1, 1]} : vector<16x32xf32> to vector<16x8xf32>
    %cst_41 = arith.constant dense<0.000000e+00> : vector<8x16xf32>
    %73 = tpu.matmul %70, %71, %cst_41 {dimension_numbers = #tpu.dot_dimension_numbers<[1], [1], [0], [0], [0, 0, 1, 0], [], []>} : vector<8x8xf32>, vector<16x8xf32>, vector<8x16xf32> -> vector<8x16xf32>
    %cst_42 = arith.constant 0.353553385 : f32
    %74 = vector.broadcast %cst_42 : f32 to vector<8x16xf32>
    %75 = arith.mulf %73, %74 : vector<8x16xf32>
    %cst_43 = arith.constant -3.40282347E+38 : f32
    %76 = vector.broadcast %cst_43 : f32 to vector<8x16xf32>
    %77 = arith.select %25, %75, %76 : vector<8x16xi1>, vector<8x16xf32>
    %cst_44 = arith.constant dense<0xFF800000> : vector<8xf32>
    %78 = vector.multi_reduction <maximumf>, %77, %cst_44 [1] : vector<8x16xf32> to vector<8xf32>
    %79 = vector.shape_cast %78 : vector<8xf32> to vector<8x1xf32>
    %80 = vector.broadcast %79 : vector<8x1xf32> to vector<8x16xf32>
    %81 = arith.subf %77, %80 : vector<8x16xf32>
    %82 = math.exp %81 : vector<8x16xf32>
    %cst_45 = arith.constant dense<0.000000e+00> : vector<8xf32>
    %83 = vector.multi_reduction <add>, %82, %cst_45 [1] : vector<8x16xf32> to vector<8xf32>
    %84 = vector.shape_cast %83 : vector<8xf32> to vector<8x1xf32>
    %85 = tpu.reciprocal %84 {approx = true} : vector<8x1xf32> -> vector<8x1xf32>
    %86 = vector.broadcast %85 : vector<8x1xf32> to vector<8x16xf32>
    %87 = arith.mulf %82, %86 : vector<8x16xf32>
    %c0_46 = arith.constant 0 : index
    %c2 = arith.constant 2 : index
    %c0_47 = arith.constant 0 : index
    %c0_48 = arith.constant 0 : index
    %88 = vector.load %arg14[%c0_46, %c2, %c0_47, %c0_48] : memref<1x4x8x16xf32, #tpu.memory_space<vmem>>, vector<1x1x8x16xf32>
    %89 = vector.shape_cast %88 : vector<1x1x8x16xf32> to vector<8x16xf32>
    %90 = vector.shape_cast %87 : vector<8x16xf32> to vector<1x1x8x16xf32>
    tpu.vector_store %arg14[%c0_46, %c2, %c0_47, %c0_48], %90 {strides = array<i32>} : memref<1x4x8x16xf32, #tpu.memory_space<vmem>>, vector<1x1x8x16xf32>,
    %cst_49 = arith.constant dense<0.000000e+00> : vector<8x8xf32>
    %91 = tpu.matmul %87, %72, %cst_49 {dimension_numbers = #tpu.dot_dimension_numbers<[1], [0], [0], [1], [0, 0, 1, 1], [], []>} : vector<8x16xf32>, vector<16x8xf32>, vector<8x8xf32> -> vector<8x8xf32>
    %92 = vector.extract_strided_slice %10 {offsets = [0, 24], sizes = [8, 8], strides = [1, 1]} : vector<8x32xf32> to vector<8x8xf32>
    %93 = vector.extract_strided_slice %15 {offsets = [0, 24], sizes = [16, 8], strides = [1, 1]} : vector<16x32xf32> to vector<16x8xf32>
    %94 = vector.extract_strided_slice %20 {offsets = [0, 24], sizes = [16, 8], strides = [1, 1]} : vector<16x32xf32> to vector<16x8xf32>
    %cst_50 = arith.constant dense<0.000000e+00> : vector<8x16xf32>
    %95 = tpu.matmul %92, %93, %cst_50 {dimension_numbers = #tpu.dot_dimension_numbers<[1], [1], [0], [0], [0, 0, 1, 0], [], []>} : vector<8x8xf32>, vector<16x8xf32>, vector<8x16xf32> -> vector<8x16xf32>
    %cst_51 = arith.constant 0.353553385 : f32
    %96 = vector.broadcast %cst_51 : f32 to vector<8x16xf32>
    %97 = arith.mulf %95, %96 : vector<8x16xf32>
    %cst_52 = arith.constant -3.40282347E+38 : f32
    %98 = vector.broadcast %cst_52 : f32 to vector<8x16xf32>
    %99 = arith.select %25, %97, %98 : vector<8x16xi1>, vector<8x16xf32>
    %cst_53 = arith.constant dense<0xFF800000> : vector<8xf32>
    %100 = vector.multi_reduction <maximumf>, %99, %cst_53 [1] : vector<8x16xf32> to vector<8xf32>
    %101 = vector.shape_cast %100 : vector<8xf32> to vector<8x1xf32>
    %102 = vector.broadcast %101 : vector<8x1xf32> to vector<8x16xf32>
    %103 = arith.subf %99, %102 : vector<8x16xf32>
    %104 = math.exp %103 : vector<8x16xf32>
    %cst_54 = arith.constant dense<0.000000e+00> : vector<8xf32>
    %105 = vector.multi_reduction <add>, %104, %cst_54 [1] : vector<8x16xf32> to vector<8xf32>
    %106 = vector.shape_cast %105 : vector<8xf32> to vector<8x1xf32>
    %107 = tpu.reciprocal %106 {approx = true} : vector<8x1xf32> -> vector<8x1xf32>
    %108 = vector.broadcast %107 : vector<8x1xf32> to vector<8x16xf32>
    %109 = arith.mulf %104, %108 : vector<8x16xf32>
    %c0_55 = arith.constant 0 : index
    %c3 = arith.constant 3 : index
    %c0_56 = arith.constant 0 : index
    %c0_57 = arith.constant 0 : index
    %110 = vector.load %arg14[%c0_55, %c3, %c0_56, %c0_57] : memref<1x4x8x16xf32, #tpu.memory_space<vmem>>, vector<1x1x8x16xf32>
    %111 = vector.shape_cast %110 : vector<1x1x8x16xf32> to vector<8x16xf32>
    %112 = vector.shape_cast %109 : vector<8x16xf32> to vector<1x1x8x16xf32>
    tpu.vector_store %arg14[%c0_55, %c3, %c0_56, %c0_57], %112 {strides = array<i32>} : memref<1x4x8x16xf32, #tpu.memory_space<vmem>>, vector<1x1x8x16xf32>,
    %cst_58 = arith.constant dense<0.000000e+00> : vector<8x8xf32>
    %113 = tpu.matmul %109, %94, %cst_58 {dimension_numbers = #tpu.dot_dimension_numbers<[1], [0], [0], [1], [0, 0, 1, 1], [], []>} : vector<8x16xf32>, vector<16x8xf32>, vector<8x8xf32> -> vector<8x8xf32>
    %114 = tpu.concatenate %47, %69, %91, %113 in 1 : vector<8x8xf32>, vector<8x8xf32>, vector<8x8xf32>, vector<8x8xf32> -> vector<8x32xf32>
    %c0_59 = arith.constant 0 : index
    %c0_60 = arith.constant 0 : index
    %115 = vector.load %arg11[%c0_59, %c0_60] : memref<32x32xf32, #tpu.memory_space<vmem>>, vector<32x32xf32>
    %cst_61 = arith.constant dense<0.000000e+00> : vector<8x32xf32>
    %116 = tpu.matmul %114, %115, %cst_61 {dimension_numbers = #tpu.dot_dimension_numbers<[1], [0], [0], [1], [0, 0, 1, 1], [], []>} : vector<8x32xf32>, vector<32x32xf32>, vector<8x32xf32> -> vector<8x32xf32>
    %c0_62 = arith.constant 0 : index
    %c0_63 = arith.constant 0 : index
    %117 = vector.load %arg12[%c0_62, %c0_63] : memref<1x32xf32, #tpu.memory_space<vmem>>, vector<1x32xf32>
    %118 = vector.broadcast %117 : vector<1x32xf32> to vector<8x32xf32>
    %119 = arith.addf %116, %118 : vector<8x32xf32>
    %c0_64 = arith.constant 0 : index
    %c0_65 = arith.constant 0 : index
    %c0_66 = arith.constant 0 : index
    %120 = vector.load %arg13[%c0_64, %c0_65, %c0_66] : memref<1x8x32xf32, #tpu.memory_space<vmem>>, vector<1x8x32xf32>
    %121 = vector.shape_cast %120 : vector<1x8x32xf32> to vector<8x32xf32>
    %122 = vector.shape_cast %119 : vector<8x32xf32> to vector<1x8x32xf32>
    tpu.vector_store %arg13[%c0_64, %c0_65, %c0_66], %122 {strides = array<i32>} : memref<1x8x32xf32, #tpu.memory_space<vmem>>, vector<1x8x32xf32>,
    return
  }
  func.func @transform_0(%arg0: i32, %arg1: memref<2xi32, #tpu.memory_space<smem>>) -> (i32, i32, i32) {
    %c0_i32 = arith.constant 0 : i32
    %c0_i32_0 = arith.constant 0 : i32
    %c0_i32_1 = arith.constant 0 : i32
    return %arg0, %c0_i32, %c0_i32_0 : i32, i32, i32
  }
  func.func @transform_1(%arg0: i32, %arg1: memref<2xi32, #tpu.memory_space<smem>>) -> (i32, i32, i32) {
    %c0_i32 = arith.constant 0 : i32
    %c0_i32_0 = arith.constant 0 : i32
    %c0_i32_1 = arith.constant 0 : i32
    return %arg0, %c0_i32, %c0_i32_0 : i32, i32, i32
  }
  func.func @transform_2(%arg0: i32, %arg1: memref<2xi32, #tpu.memory_space<smem>>) -> (i32, i32, i32) {
    %c0_i32 = arith.constant 0 : i32
    %c0_i32_0 = arith.constant 0 : i32
    %c0_i32_1 = arith.constant 0 : i32
    return %arg0, %c0_i32, %c0_i32_0 : i32, i32, i32
  }
  func.func @transform_3(%arg0: i32, %arg1: memref<2xi32, #tpu.memory_space<smem>>) -> (i32, i32) {
    %c0_i32 = arith.constant 0 : i32
    %c0_i32_0 = arith.constant 0 : i32
    %c0_i32_1 = arith.constant 0 : i32
    return %c0_i32, %c0_i32_0 : i32, i32
  }
  func.func @transform_4(%arg0: i32, %arg1: memref<2xi32, #tpu.memory_space<smem>>) -> (i32, i32) {
    %c0_i32 = arith.constant 0 : i32
    %c0_i32_0 = arith.constant 0 : i32
    %c0_i32_1 = arith.constant 0 : i32
    return %c0_i32, %c0_i32_0 : i32, i32
  }
  func.func @transform_5(%arg0: i32, %arg1: memref<2xi32, #tpu.memory_space<smem>>) -> (i32, i32) {
    %c0_i32 = arith.constant 0 : i32
    %c0_i32_0 = arith.constant 0 : i32
    %c0_i32_1 = arith.constant 0 : i32
    return %c0_i32, %c0_i32_0 : i32, i32
  }
  func.func @transform_6(%arg0: i32, %arg1: memref<2xi32, #tpu.memory_space<smem>>) -> (i32, i32) {
    %c0_i32 = arith.constant 0 : i32
    %c0_i32_0 = arith.constant 0 : i32
    %c0_i32_1 = arith.constant 0 : i32
    return %c0_i32, %c0_i32_0 : i32, i32
  }
  func.func @transform_7(%arg0: i32, %arg1: memref<2xi32, #tpu.memory_space<smem>>) -> (i32, i32) {
    %c0_i32 = arith.constant 0 : i32
    %c0_i32_0 = arith.constant 0 : i32
    %c0_i32_1 = arith.constant 0 : i32
    return %c0_i32, %c0_i32_0 : i32, i32
  }
  func.func @transform_8(%arg0: i32, %arg1: memref<2xi32, #tpu.memory_space<smem>>) -> (i32, i32) {
    %c0_i32 = arith.constant 0 : i32
    %c0_i32_0 = arith.constant 0 : i32
    %c0_i32_1 = arith.constant 0 : i32
    return %c0_i32, %c0_i32_0 : i32, i32
  }
  func.func @transform_9(%arg0: i32, %arg1: memref<2xi32, #tpu.memory_space<smem>>) -> (i32, i32) {
    %c0_i32 = arith.constant 0 : i32
    %c0_i32_0 = arith.constant 0 : i32
    %c0_i32_1 = arith.constant 0 : i32
    return %c0_i32, %c0_i32_0 : i32, i32
  }
  func.func @transform_10(%arg0: i32, %arg1: memref<2xi32, #tpu.memory_space<smem>>) -> (i32, i32) {
    %c0_i32 = arith.constant 0 : i32
    %c0_i32_0 = arith.constant 0 : i32
    %c0_i32_1 = arith.constant 0 : i32
    return %c0_i32, %c0_i32_0 : i32, i32
  }
  func.func @transform_11(%arg0: i32, %arg1: memref<2xi32, #tpu.memory_space<smem>>) -> (i32, i32, i32) {
    %c0_i32 = arith.constant 0 : i32
    %c0_i32_0 = arith.constant 0 : i32
    %c0_i32_1 = arith.constant 0 : i32
    return %arg0, %c0_i32, %c0_i32_0 : i32, i32, i32
  }
  func.func @transform_12(%arg0: i32, %arg1: memref<2xi32, #tpu.memory_space<smem>>) -> (i32, i32, i32, i32) {
    %c0_i32 = arith.constant 0 : i32
    %c0_i32_0 = arith.constant 0 : i32
    %c0_i32_1 = arith.constant 0 : i32
    %c0_i32_2 = arith.constant 0 : i32
    return %arg0, %c0_i32, %c0_i32_0, %c0_i32_1 : i32, i32, i32, i32
  }
}

</mosaic_0001>

<bundles_post_ra>
// kernel: tpu_custom_call.1
= control target key start
LH: loop header
LB: loop body
LE: loop exit
PB: predicated region body
PF: predicated region fallthrough
CT: control target
= control target key end

     0   :  { %s1825_s28 = smov [#allocation3]   ;;  %s2255_s0 = inlined_call_operand.hbm [shape: s32[2], index: 0, kind: input, shape index: {}]   ;;  %s2256_s1 = inlined_call_operand.hbm [shape: f32[2,8,32], index: 1, kind: input, shape index: {}]   ;;  %s2257_s2 = inlined_call_operand.hbm [shape: f32[2,16,32], index: 2, kind: input, shape index: {}]   ;;  %s2258_s3 = inlined_call_operand.hbm [shape: f32[2,16,32], index: 3, kind: input, shape index: {}]   ;;  %s2259_s4 = inlined_call_operand.hbm [shape: f32[32,32], index: 4, kind: input, shape index: {}]   ;;  %s2260_s5 = inlined_call_operand.vmem [shape: f32[1,32], index: 5, kind: input, shape index: {}]   ;;  %s2261_s6 = inlined_call_operand.hbm [shape: f32[32,32], index: 6, kind: input, shape index: {}]   ;;  %s2262_s7 = inlined_call_operand.vmem [shape: f32[1,32], index: 7, kind: input, shape index: {}]   ;;  %s2263_s8 = inlined_call_operand.hbm [shape: f32[32,32], index: 8, kind: input, shape index: {}]   ;;  %s2264_s9 = inlined_call_operand.vmem [shape: f32[1,32], index: 9, kind: input, shape index: {}]   ;;  %s2265_s10 = inlined_call_operand.hbm [shape: f32[32,32], index: 10, kind: input, shape index: {}]   ;;  %s2266_s11 = inlined_call_operand.vmem [shape: f32[1,32], index: 11, kind: input, shape index: {}]   ;;  %s2267_s12 = inlined_call_operand.hbm [shape: f32[2,8,32], index: 12, kind: output, shape index: {0}]   ;;  %s2268_s13 = inlined_call_operand.hbm [shape: f32[2,4,8,16], index: 13, kind: output, shape index: {1}]  }
   0x1   :  { %2283 = sst [smem:[#allocation32_spill]] %s2257_s2  ;;  %s20_s27 = sshll.u32 %s2255_s0, 4  ;;  %s21_s27 = int_to_ptr.hbm [resolvable:$true] %s20_s27 }
   0x2   :  { %2284 = sst [smem:[#allocation33_spill]] %s2259_s4 }
   0x3   :  { %2285 = sst [smem:[#allocation34_spill]] %s2261_s6 }
   0x4   :  { %2286 = sst [smem:[#allocation35_spill]] %s2263_s8 }
   0x5   :  { %2287 = sst [smem:[#allocation36_spill]] %s2264_s9 }
   0x6   :  { %2288 = sst [smem:[#allocation37_spill]] %s2266_s11 }
   0x7   :  { %2289 = sst [smem:[#allocation38_spill]] %s2267_s12 }
   0x8   :  { %2290 = sst [smem:[#allocation39_spill]] %s2268_s13 }
   0x9   :  { %23 = dma.hbm_to_smem %s21_s27, 16, %s1825_s28, [#allocation2] }
   0xa   :  { %1783 = dma.done.wait [#allocation2], 16 }
   0xb   :  { %1784 = vsyncadd [#allocation2], 4294967280 }
   0xc   :  { %26 = sfence }
   0xd   :  { %27 = vsyncpa [#allocation5], 0 }
   0xe   :  { %29 = vsyncpa [#allocation5 + $0x1], 0 }
   0xf   :  { %30 = vsyncpa [#allocation8], 0 }
  0x10   :  { %32 = vsyncpa [#allocation8 + $0x1], 0 }
  0x11   :  { %33 = vsyncpa [#allocation11], 0 }
  0x12   :  { %34 = vsyncpa [#allocation14], 0 }
  0x13   :  { %35 = vsyncpa [#allocation6], 0 }
  0x14   :  { %37 = vsyncpa [#allocation6 + $0x1], 0 }
  0x15   :  { %38 = vsyncpa [#allocation18], 0 }
  0x16   :  { %40 = vsyncpa [#allocation18 + $0x1], 0  ;;  %s1912_s29 = smov 0   ;;  %s1914_s30 = smov 0  }
  0x17   :  { %s1916_s0 = smov 0   ;;  %s1918_s14 = smov 0  }
  0x18 LB: > { %2291 = sst [smem:[#allocation26_spill]] %s1811_s29  ;;  %s1933_s15 = sadd.s32 4294967295, %s1823_s14   ;;  %s1823_s14 = sphi %s1918_s14, %s2324_s14   ;;  %s1819_s0 = sphi %s1916_s0, %s2329_s0   ;;  %s1815_s30 = sphi %s1914_s30, %s2328_s30   ;;  %s1811_s29 = sphi %s1912_s29, %s2327_s29  }
  0x19   : > { %2292 = sst [smem:[#allocation27_spill]] %s1819_s0  ;;  %s1282_s16 = sadd.s32 4294967294, %s1823_s14  }
  0x1a   : > { %p66_p0 = scmp.ne.s32.totalorder %s1815_s30, %s1811_s29  ;;  %p2279_p1 = scmp.eq.s32.totalorder %s1933_s15, 0 }
  0x1b   : > { %p310_p2 = scmp.eq.s32.totalorder %s1933_s15, 1  ;;  %p316_p3 = scmp.eq.s32.totalorder %s1282_s16, 1 }
  0x1c   : > { %p1942_p4 = por %p2279_p1, %p66_p0  ;;  %p1283_p5 = scmp.ge.s32.totalorder %s1823_s14, 1 }
  0x1d   : > { %p1947_p6 = por %p316_p3, %p66_p0  ;;  %p349_p7 = scmp.lt.s32.totalorder %s1823_s14, 3 }
  0x1e   : > { %s2296_s4 = sld [smem:[#allocation33_spill]]  ;;  %s1826_s23 = smov [#allocation10]  }
  0x1f   : > { %s2294_s18 = scalar_select %p1947_p6, 1, 0 }
  0x20   : > { %p1955_p8 = pnand %p1283_p5, %p349_p7  ;;  %s362_s24 = sshll.u32 %s1826_s23, 4  ;;  %s363_s24 = int_to_ptr.vmem [resolvable:$true] %s362_s24 }
  0x21   : > { %2295 = sst [smem:[#allocation28_spill]] %s2294_s18  ;;  %s2269_s16 = smov 128  }
  0x22   : > { %p1368_p9 = pneg %p1955_p8  ;;  %s2299_s8 = sld [smem:[#allocation35_spill]] }
  0x23   : > { %s2271_s19 = smov 8   ;;  %s1829_s20 = smov [#allocation13]  }
  0x24   : > { %s360_s21 = sshll.u32 %s2296_s4, 4  ;;  %p1963_p10 = pnand %p1368_p9, %p2279_p1  ;;  %s361_s21 = int_to_ptr.hbm [resolvable:$true] %s360_s21 }
  0x25   : > { %s396_s23 = sshll.u32 %s1829_s20, 4  ;;  %s1982_s26 = sadd.s32 1, %s1823_s14   ;;  %s397_s23 = int_to_ptr.vmem [resolvable:$true] %s396_s23 }
  0x26   : > { %1371 = dma.hbm_to_vmem [thread:$0]  (!%p1963_p10), %s361_s21, 512, %s363_s24, [#allocation11], %s2269_s16, %s2269_s16, %s2271_s19  }
  0x27   : > { %2300 = sst [smem:[#allocation29_spill]] %s1982_s26  ;;  %s53_s27 = sadd.s32 1, %s1819_s0 }
  0x28   : > { %s394_s28 = sshll.u32 %s2299_s8, 4  ;;  %s50_s4 = ssub.s32 %s1823_s14, %s1982_s26  ;;  %s395_s28 = int_to_ptr.hbm [resolvable:$true] %s394_s28 }
  0x29   : > { %1377 = dma.hbm_to_vmem [thread:$0]  (!%p1963_p10), %s395_s28, 512, %s397_s23, [#allocation14], %s2269_s16, %s2269_s16, %s2271_s19  }
  0x2a   : > { %p60_p12 = scmp.ne.s32.totalorder %s1819_s0, %s1815_s30  ;;  %p51_p13 = scmp.eq.s32.totalorder %s50_s4, 0 }
  0x2b   : > { %p61_p0 = scmp.eq.s32.totalorder %s1823_s14, 0  ;;  %p1402_p5 = scmp.lt.s32.totalorder %s1823_s14, 2 }
  0x2c   : > { %p1992_p3 = por %p310_p2, %p60_p12  ;;  %s2001_s20 = sand.u32 1, %s1819_s0  }
  0x2d   : > { %s1998_s24 = scalar_select %p51_p13, %s1819_s0, %s53_s27  }
  0x2e   : > { %s2301_s21 = scalar_select %p1992_p3, 1, 0 }
  0x2f   : > { %2303 = sst [smem:[#allocation31_spill]] %s1998_s24  ;;  %p62_p7 = por %p61_p0, %p60_p12 }
  0x30   : > { %2302 = sst [smem:[#allocation30_spill]] %s2301_s21  ;;  %s449_s28 = sand.u32 1, %s1823_s14  }
  0x31   : > { %s1291_s23 = sshll.u32 %s2001_s20, 4  ;;  %p2005_p9 = pnand %p1402_p5, %p62_p7 }
  0x32   : > { %s1339_s4 = sshll.u32 %s1823_s14, 4  ;;  %s2305_s2 = sld [smem:[#allocation32_spill]] }
  0x33   : > { %s453_s27 = scalar_lea.vmem [#allocation7], %s1291_s23  ;;  %s2013_s0 = scalar_lea.sflag [#allocation8], %s449_s28 }
  0x34   : > { %s461_s24 = sshll.u32 %s453_s27, 4  ;;  %p1565_p12 = pneg %p2005_p9  ;;  %s462_s24 = int_to_ptr.vmem [resolvable:$true] %s461_s24 }
  0x38   : > { %s458_s26 = scalar_lea.hbm %s2305_s2, %s1339_s4  ;;  %s1568_s19 = scalar_lea.hbm %s2305_s2, 32 }
  0x39   : > { %s459_s18 = sshll.u32 %s458_s26, 4  ;;  %s460_s18 = int_to_ptr.hbm [resolvable:$true] %s459_s18 }
  0x3a   : > { %s1561_s29 = sshra.s32 %s460_s18, 4  ;;  %s1562_s29 = int_to_ptr.hbm [resolvable:$true] %s1561_s29 }
  0x3b   : > { %s1563_s11 = scalar_lea.hbm %s1562_s29, 16  ;;  %p1569_p5 = scmp.lt.s32.totalorder %s1562_s29, %s2305_s2 }
  0x3c   : > { %p1564_p2 = scmp.ne.s32.totalorder %s1562_s29, %s1563_s11  ;;  %p1570_p7 = scmp.lt.s32.totalorder %s1568_s19, %s1563_s11 }
  0x3e   : > { %p1566_p13 = pnand %p1565_p12, %p1564_p2  ;;  %p1571_p11 = por %p1570_p7, %p1569_p5 }
  0x40   : > { %p1567_p0 = pneg %p1566_p13 }
  0x42   : > { %p1572_p1 = pnand %p1571_p11, %p1567_p0 }
  0x44   : > { %1575 = shalt.err (!%p1572_p1)
}
  0x45   : > { %s2306_s28 = smov 8   ;;  %s2307_s13 = smov 128  }
  0x46   : > { %1387 = dma.hbm_to_vmem [thread:$0]  (!%p2005_p9), %s460_s18, 256, %s462_s24, %s2013_s0, %s2307_s13, %s2307_s13, %s2306_s28  }
  0x47   : > { %s480_s12 = scalar_lea.hbm %s2258_s3, %s1339_s4  ;;  %s475_s26 = scalar_lea.vmem [#allocation9], %s1291_s23 }
  0x48   : > { %s481_s8 = sshll.u32 %s480_s12, 4  ;;  %s483_s11 = sshll.u32 %s475_s26, 4  ;;  %s2035_s8 = int_to_ptr.hbm [resolvable:$true] %s481_s8  ;;  %s2037_s11 = int_to_ptr.vmem [resolvable:$true] %s483_s11 }
  0x49   : > { %s2308_s6 = sld [smem:[#allocation34_spill]]  ;;  %s1830_s18 = smov [#allocation12]  }
  0x4a   : > { %s379_s24 = sshll.u32 %s1830_s18, 4  ;;  %s411_s23 = sshll.u32 %s2265_s10, 4  ;;  %s380_s24 = int_to_ptr.vmem [resolvable:$true] %s379_s24  ;;  %s412_s23 = int_to_ptr.hbm [resolvable:$true] %s411_s23 }
  0x4b   : > { %s1831_s4 = smov [#allocation15]   ;;  %s1289_s26 = sshll.u32 %s2001_s20, 3 }
  0x4c   : > { %s413_s12 = sshll.u32 %s1831_s4, 4  ;;  %s1290_s29 = sshll.u32 %s1823_s14, 3  ;;  %s414_s12 = int_to_ptr.vmem [resolvable:$true] %s413_s12 }
  0x4d   : > { %1380 = dma.hbm_to_vmem [thread:$0]  (!%p1963_p10), %s412_s23, 512, %s414_s12, [#allocation14], %s2307_s13, %s2307_s13, %s2306_s28  }
  0x4e   : > { %s438_s9 = scalar_lea.hbm %s2256_s1, %s1290_s29  ;;  %s434_s21 = scalar_lea.vmem [#allocation4], %s1289_s26 }
  0x4f   : > { %s377_s27 = sshll.u32 %s2308_s6, 4  ;;  %s442_s2 = sshll.u32 %s434_s21, 4  ;;  %s378_s27 = int_to_ptr.hbm [resolvable:$true] %s377_s27  ;;  %s443_s2 = int_to_ptr.vmem [resolvable:$true] %s442_s2 }
  0x50   : > { %1374 = dma.hbm_to_vmem [thread:$0]  (!%p1963_p10), %s378_s27, 512, %s380_s24, [#allocation11], %s2307_s13, %s2307_s13, %s2306_s28  }
  0x51   : > { %s440_s6 = sshll.u32 %s438_s9, 4  ;;  %s431_s27 = scalar_lea.sflag [#allocation5], %s2001_s20  ;;  %s441_s6 = int_to_ptr.hbm [resolvable:$true] %s440_s6 }
  0x52   : > { %s1651_s24 = sshra.s32 %s441_s6, 4  ;;  %s1658_s12 = scalar_lea.hbm %s2256_s1, 16  ;;  %s1652_s24 = int_to_ptr.hbm [resolvable:$true] %s1651_s24 }
  0x53   : > { %s1653_s4 = scalar_lea.hbm %s1652_s24, 8  ;;  %p1659_p10 = scmp.lt.s32.totalorder %s1652_s24, %s2256_s1 }
  0x54   : > { %p1654_p1 = scmp.ne.s32.totalorder %s1652_s24, %s1653_s4  ;;  %p1660_p13 = scmp.lt.s32.totalorder %s1658_s12, %s1653_s4 }
  0x56   : > { %p1656_p11 = pnand %p1654_p1, %p1565_p12  ;;  %p1661_p0 = por %p1660_p13, %p1659_p10 }
  0x58   : > { %p1657_p2 = pneg %p1656_p11 }
  0x5a   : > { %p1662_p5 = pnand %p1661_p0, %p1657_p2 }
  0x5c   : > { %1665 = shalt.err (!%p1662_p5)
}
  0x5d   : > { %1384 = dma.hbm_to_vmem [thread:$0]  (!%p2005_p9), %s441_s6, 128, %s443_s2, %s431_s27  }
  0x5e   : > { %s1681_s20 = sshra.s32 %s2035_s8, 4  ;;  %s1688_s21 = scalar_lea.hbm %s2258_s3, 32  ;;  %s1682_s20 = int_to_ptr.hbm [resolvable:$true] %s1681_s20 }
  0x5f   : > { %s1683_s26 = scalar_lea.hbm %s1682_s20, 16  ;;  %p1689_p2 = scmp.lt.s32.totalorder %s1682_s20, %s2258_s3 }
  0x60   : > { %p1684_p7 = scmp.ne.s32.totalorder %s1682_s20, %s1683_s26  ;;  %p1690_p10 = scmp.lt.s32.totalorder %s1688_s21, %s1683_s26 }
  0x62   : > { %p1686_p1 = pnand %p1684_p7, %p1565_p12  ;;  %p1691_p13 = por %p1690_p10, %p1689_p2 }
  0x64   : > { %p1687_p11 = pneg %p1686_p1 }
  0x66   : > { %p1692_p0 = pnand %p1691_p13, %p1687_p11 }
  0x68   : > { %1695 = shalt.err (!%p1692_p0)
}
  0x69   : > { %1390 = dma.hbm_to_vmem [thread:$0]  (!%p2005_p9), %s2035_s8, 256, %s2037_s11, %s2013_s0, %s2307_s13, %s2307_s13, %s2306_s28  }
  0x6a   : > { %495 = sbr.rel (%p1955_p8) target bundleno = 1181 (0x49d), region = 64  ;;  %s2093_s2 = sand.u32 (!%p1955_p8), 1, %s1815_s30  }
  0x6b   : > { %s1298_s6 = sshll.u32 (!%p1955_p8), %s2093_s2, 3  ;;  %s498_s27 = scalar_lea.sflag (!%p1955_p8), [#allocation5], %s2093_s2 }
  0x6c   : > { %s501_s16 = scalar_lea.vmem (!%p1955_p8), [#allocation4], %s1298_s6 }
  0x6f   : > { %1786 = dma.done.wait (%p1942_p4), %s498_s27, 128  }
  0x70   : > { %1788 = vsyncadd (%p1942_p4), %s498_s27, 4294967168  ;;  %s507_s13 = sand.u32 1, %s1933_s15   ;;  %s1299_s0 = sshll.u32 %s2093_s2, 4 }
  0x71   : > { %s508_s22 = scalar_lea.sflag [#allocation8], %s507_s13  ;;  %s511_s28 = scalar_lea.vmem [#allocation7], %s1299_s0 }
  0x72   : > { %1790 = dma.done.wait (%p1942_p4), %s508_s22, 512  }
  0x73   : > { %1792 = vsyncadd (%p1942_p4), %s508_s22, 4294966784  ;;  %s2109_s8 = scalar_lea.vmem [#allocation9], %s1299_s0  ;;  %p2309_p8 = scmp.eq.s32.totalorder %s1933_s15, 0 }
  0x75   : > { %1794 = dma.done.wait (%p2309_p8), [#allocation11], 1024   ;;  %p2310_p9 = pmov %p2309_p8 }
  0x76   : > { %p2311_p12 = pmov %p2309_p8 }
  0x77   : > { %1796 = vsyncadd (%p2310_p9), [#allocation11], 4294966272 }
  0x78   : > { %1798 = dma.done.wait (%p2311_p12), [#allocation14], 1024   ;;  %p2312_p5 = pmov %p2309_p8 }
  0x79   : > { %v606_v0 = vld [vmem:[#allocation10 + $0x18] sm:$0xff]  ;;  %v605_v2 = vld [vmem:[#allocation10 + $0x10] sm:$0xff]  ;;  %v604_v4 = vld [vmem:[#allocation10 + $0x8] sm:$0xff]  ;;  %vm611_vm0 = vcmask 261120   ;;  %s1832_s12 = smov 112   ;;  %s1833_s19 = smov 120   ;;  %v709_v30 = vlaneseq }
  0x7a   : > { %1800 = vsyncadd (%p2312_p5), [#allocation14], 4294966272  ;;  %v638_v1 = vld [vmem:[#allocation12 + $0x18] sm:$0xff]  ;;  %627 = vmatpush.msra.mxu0 %v606_v0  ;;  %v637_v3 = vld [vmem:[#allocation12 + $0x10] sm:$0xff]  ;;  %vm714_vm1 = vcmask 64512   ;;  %s1834_s29 = smov 104  }
  0x7b   : > { %661 = vmatpush.msra.mxu1 %v638_v1  ;;  %v636_v5 = vld [vmem:[#allocation12 + $0x8] sm:$0xff]  ;;  %v603_v6 = vld [vmem:[#allocation10] sm:$0xff]  ;;  %v598_v8 = vld [vmem:[%s501_s16] sm:$0xff]  ;;  %s711_s20 = sld [smem:[#allocation3 + %s1933_s15]]  ;;  %v710_v32 = vand.u32 127, %v709_v30  ;;  %vm746_vm3 = vcmask 130048  }
  0x7c   : > { %628 = vmatpush.msra.mxu0 %v605_v2  ;;  %v635_v7 = vld [vmem:[#allocation12] sm:$0xff]  ;;  %v600_v10 = vld [vmem:[%s511_s28 + $0x8] sm:$0xff]  ;;  %v1469_v11 = vld [vmem:[%s2260_s5] ss:$0 sm:$0xff]  ;;  %s2315_s9 = sld [smem:[#allocation36_spill]]  ;;  %s1306_s21 = sshll.u32 %s2093_s2, 5 }
  0x7d   : > { %662 = vmatpush.msra.mxu1 %v637_v3  ;;  %v599_v9 = vld [vmem:[%s511_s28] sm:$0xff]  ;;  %v675_v20 = vld [vmem:[#allocation13 + $0x18] sm:$0xff]  ;;  %v673_v23 = vld [vmem:[#allocation13 + $0x8] sm:$0xff]  ;;  %s2178_s24 = scalar_lea.vmem [#allocation17], %s1306_s21  ;;  %s1835_s4 = smov 8   ;;  %vm1026_vm4 = vcmask 195584  }
  0x7e   : > { %629 = vmatpush.msra.mxu0 %v604_v4  ;;  %v1470_v12 = vld [vmem:[%s2262_s7] ss:$0 sm:$0xff]  ;;  %698 = vmatpush.msra.mxu2 %v675_v20  ;;  %v672_v39 = vld [vmem:[#allocation13] sm:$0xff]  ;;  %v602_v41 = vld [vmem:[%s2109_s8 + $0x8] sm:$0xff]  ;;  %s1836_s27 = smov 24   ;;  %s1837_s16 = smov 16  }
  0x7f   : > { %663 = vmatpush.msra.mxu1 %v636_v5  ;;  %v674_v21 = vld [vmem:[#allocation13 + $0x10] sm:$0xff]  ;;  %s1341_s0 = sshll.u32 %s1933_s15, 5  ;;  %s1092_s11 = sshll.u32 %s2178_s24, 4  ;;  %s1093_s11 = int_to_ptr.vmem [resolvable:$true] %s1092_s11 }
  0x80   : > { %630 = vmatpush.msra.mxu0 %v603_v6  ;;  %699 = vmatpush.msra.mxu2 %v674_v21  ;;  %v601_v40 = vld [vmem:[%s2109_s8] sm:$0xff]  ;;  %s2317_s8 = sld [smem:[#allocation39_spill]]  ;;  %s1066_s23 = scalar_lea.sflag [#allocation18], %s2093_s2 }
  0x81   : > { %664 = vmatpush.msra.mxu1 %v635_v7  ;;  %1307 = vmatmul.msk.f32.vlgmr.msra.gmra.mxu0 %vm611_vm0, %v598_v8  ;;  %v712_v33 = vstv %s711_s20 }
  0x82   : > { %1308 = vmatmul.msk.f32.vlgmr.msra.gmra.mxu1 %vm611_vm0, %v599_v9  ;;  %700 = vmatpush.msra.mxu2 %v673_v23  ;;  %vm2150_vm2 = vcmp.lt.s32.totalorder %v710_v32, %v712_v33  ;;  %v1471_v60 = vld [vmem:[%s2315_s9] ss:$0 sm:$0xff] }
  0x84   : > { %701 = vmatpush.msra.mxu2 %v672_v39 }
  0x85   : > { %1310 = vmatmul.msk.f32.vlgmr.msra.gmra.mxu2 %vm611_vm0, %v601_v40 }
  0x86   : > { %s1091_s17 = scalar_lea.hbm %s2317_s8, %s1341_s0  ;;  %s1731_s26 = scalar_lea.hbm %s2317_s8, 64 }
  0x87   : > { %s1094_s25 = sshll.u32 %s1091_s17, 4  ;;  %s1095_s25 = int_to_ptr.hbm [resolvable:$true] %s1094_s25 }
  0x8a   : > { %1309 = vmatmul.msk.f32.gmra.mxu1 %vm611_vm0, %v600_v10 }
  0x8d   : > { %1311 = vmatmul.msk.f32.gmra.mxu2 %vm611_vm0, %v602_v41  ;;  %v1031_v41 = vld [vmem:[#allocation15 + $0x18] sm:$0xff] }
  0xfe   : > { %v632_v13 = vpop.f32.mrf.mxu0 }
  0xff   : > { %v666_v14 = vpop.f32.mrf.mxu1  ;;  %v633_v15 = vadd.f32 %v1469_v11, %v632_v13 }
 0x100   : > { %v667_v16 = vadd.f32 %v1470_v12, %v666_v14 }
 0x101   : > { %782 = vrot.lane.b32.xlu1 %v633_v15, %s1833_s19 }
 0x102   : > { %862 = vrot.lane.b32.xlu2 %v667_v16, %s1832_s12 }
 0x107   : > { %v669_v17 = vpop.f32.mrf.mxu1 }
 0x108   : > { %v670_v18 = vadd.f32 %v1470_v12, %v669_v17  ;;  %v703_v59 = vpop.f32.mrf.mxu2 }
 0x109   : > { %v704_v61 = vadd.f32 %v1471_v60, %v703_v59 }
 0x10a   : > { %786 = vrot.lane.b32.xlu0 %v670_v18, %s1833_s19  ;;  %1312 = vmatpush.xpose.msk.msra.mxu3 %vm714_vm1, %v670_v18 }
 0x10b   : > { %940 = vrot.lane.b32.xlu2 %v670_v18, %s1834_s29  ;;  %864 = vrot.lane.b32.xlu1 %v670_v18, %s1832_s12 }
 0x10e   : > { %1313 = vmatpush.xpose.msk.msra.mxu3 %vm714_vm1, %v667_v16 }
 0x110   : > { %v706_v62 = vpop.f32.mrf.mxu2 }
 0x111   : > { %1314 = vmatmul.msk.f32.vlgmr.msra.gmra.mxu3 %vm714_vm1, %v633_v15  ;;  %v707_v63 = vadd.f32 %v1471_v60, %v706_v62 }
 0x112   : > { %784 = vrot.lane.b32.xlu0 %v667_v16, %s1833_s19 }
 0x113   : > { %860 = vrot.lane.b32.xlu1 %v633_v15, %s1832_s12  ;;  %936 = vrot.lane.b32.xlu2 %v633_v15, %s1834_s29  ;;  %v1454_v0 = vpack.i.bf16 %v704_v61, %v707_v63 }
 0x114   : > { %776 = vmatpush.msrb.mxu0 %v707_v63 }
 0x116   : > { %777 = vmatpush.msrb.mxu0 %v704_v61 }
 0x11a   : > { %938 = vrot.lane.b32.xlu0 %v667_v16, %s1834_s29 }
 0x15c   : > { %v863_v22 = vpop.permute.xlu2 %862 }
 0x165   : > { %v941_v27 = vpop.permute.xlu2 %940 }
 0x16d   : > { %v937_v31 = vpop.permute.xlu2 %936 }
 0x173   : > { %v783_v19 = vpop.permute.xlu1 %782 }
 0x17c   : > { %v787_v24 = vpop.permute.xlu0 %786 }
 0x17d   : > { %v865_v25 = vpop.permute.xlu1 %864  ;;  %1316 = vmatpush.xpose.msk.msrb.mxu3 %vm714_vm1, %v787_v24 }
 0x17e   : > { %1321 = vmatpush.xpose.msk.msrb.mxu1 %vm714_vm1, %v865_v25 }
 0x182   : > { %1322 = vmatpush.xpose.msk.msrb.mxu1 %vm714_vm1, %v863_v22 }
 0x184   : > { %v785_v26 = vpop.permute.xlu0 %784 }
 0x185   : > { %v861_v28 = vpop.permute.xlu1 %860  ;;  %1317 = vmatpush.xpose.msk.msrb.mxu3 %vm714_vm1, %v785_v26 }
 0x186   : > { %1323 = vmatmul.msk.f32.vlgmr.msrb.gmra.mxu1 %vm714_vm1, %v861_v28 }
 0x187   : > { %1051 = vmatpush.msra.mxu1 %v1031_v41 }
 0x188   : > { %1318 = vmatmul.msk.f32.vlgmr.msrb.gmra.mxu3 %vm714_vm1, %v783_v19 }
 0x189   : > { %1326 = vmatpush.xpose.msk.msra.mxu3 %vm714_vm1, %v941_v27 }
 0x18c   : > { %v939_v29 = vpop.permute.xlu0 %938 }
 0x18d   : > { %1327 = vmatpush.xpose.msk.msra.mxu3 %vm714_vm1, %v939_v29 }
 0x190   : > { %1328 = vmatmul.msk.f32.vlgmr.msra.gmra.mxu3 %vm714_vm1, %v937_v31 }
 0x194   : > { %v741_v34 = vpop.f32.mrf.mxu3 }
 0x195   : > { %v744_v36 = vmul.f32 0.35355338, %v741_v34 }
 0x197   : > { %v745_v37 = vsel %vm2150_vm2, %v744_v36, -3.4028235e+38 }
 0x198   : > { %v747_v38 = vsel %vm746_vm3, %v745_v37, -inf }
 0x199   : > { %748 = vmax.xlane.f32.xlu0 %v747_v38 }
 0x203   : > { %v889_v42 = vpop.f32.mrf.mxu1 }
 0x204   : > { %v892_v43 = vmul.f32 0.35355338, %v889_v42  ;;  %v1030_v42 = vld [vmem:[#allocation15 + $0x10] sm:$0xff] }
 0x205   : > { %1052 = vmatpush.msra.mxu1 %v1030_v42 }
 0x206   : > { %v893_v44 = vsel %vm2150_vm2, %v892_v43, -3.4028235e+38  ;;  %v1029_v43 = vld [vmem:[#allocation15 + $0x8] sm:$0xff] }
 0x207   : > { %v894_v45 = vsel %vm746_vm3, %v893_v44, -inf  ;;  %1053 = vmatpush.msra.mxu1 %v1029_v43 }
 0x208   : > { %895 = vmax.xlane.f32.xlu2 %v894_v45 }
 0x20b   : > { %v811_v46 = vpop.f32.mrf.mxu3 }
 0x20c   : > { %v814_v47 = vmul.f32 0.35355338, %v811_v46  ;;  %v749_v48 = vpop.xlane.xlu0 %748 }
 0x20d   : > { %v750_v49 = vsub.f32 %v745_v37, %v749_v48 }
 0x20e   : > { %v815_v50 = vsel %vm2150_vm2, %v814_v47, -3.4028235e+38 }
 0x20f   : > { %v751_v51 = vmul.f32 1.442695, %v750_v49  ;;  %v816_v52 = vsel %vm746_vm3, %v815_v50, -inf }
 0x210   : > { %817 = vmax.xlane.f32.xlu1 %v816_v52 }
 0x211   : > { %1473 = vpow2.f32 %v751_v51 }
 0x213   : > { %v965_v53 = vpop.f32.mrf.mxu3 }
 0x214   : > { %v968_v54 = vmul.f32 0.35355338, %v965_v53 }
 0x216   : > { %v969_v55 = vsel %vm2150_vm2, %v968_v54, -3.4028235e+38 }
 0x217   : > { %v1474_v56 = vpop.eup %1473  ;;  %v970_v57 = vsel %vm746_vm3, %v969_v55, -inf }
 0x218   : > { %971 = vmax.xlane.f32.xlu2 %v970_v57  ;;  %v753_v58 = vsel %vm746_vm3, %v1474_v56, 0.0 }
 0x219   : > { %754 = vadd.xlane.f32.xlu0 %v753_v58 }
 0x22d   : > { %1455 = vrot.lane.b32.xlu0 %v1454_v0, %s1833_s19 }
 0x27b   : > { %v896_v1 = vpop.xlane.xlu2 %895 }
 0x27c   : > { %v897_v2 = vsub.f32 %v893_v44, %v896_v1  ;;  %v1028_v44 = vld [vmem:[#allocation15] sm:$0xff] }
 0x27d   : > { %1054 = vmatpush.msra.mxu1 %v1028_v44 }
 0x27e   : > { %v898_v3 = vmul.f32 1.442695, %v897_v2 }
 0x280   : > { %1475 = vpow2.f32 %v898_v3 }
 0x283   : > { %v818_v4 = vpop.xlane.xlu1 %817 }
 0x284   : > { %v819_v5 = vsub.f32 %v815_v50, %v818_v4 }
 0x286   : > { %v1476_v6 = vpop.eup %1475  ;;  %v820_v7 = vmul.f32 1.442695, %v819_v5 }
 0x287   : > { %v900_v8 = vsel %vm746_vm3, %v1476_v6, 0.0 }
 0x288   : > { %1477 = vpow2.f32 %v820_v7  ;;  %901 = vadd.xlane.f32.xlu2 %v900_v8 }
 0x28b   : > { %v972_v9 = vpop.xlane.xlu2 %971 }
 0x28c   : > { %v973_v10 = vsub.f32 %v969_v55, %v972_v9  ;;  %v755_v11 = vpop.xlane.xlu0 %754 }
 0x28d   : > { %1479 = vrcp.f32 %v755_v11 }
 0x28e   : > { %v1478_v12 = vpop.eup %1477  ;;  %v974_v13 = vmul.f32 1.442695, %v973_v10 }
 0x28f   : > { %v822_v14 = vsel %vm746_vm3, %v1478_v12, 0.0 }
 0x290   : > { %1481 = vpow2.f32 %v974_v13  ;;  %823 = vadd.xlane.f32.xlu1 %v822_v14 }
 0x293   : > { %v1480_v15 = vpop.eup %1479 }
 0x294   : > { %v757_v16 = vmul.f32 %v1480_v15, %v1474_v56 }
 0x296   : > { %v1482_v17 = vpop.eup %1481  ;;  %758 = vst.msk [vmem:[%s2178_s24] sm:$0xff] %vm746_vm3, %v757_v16  ;;  %1315 = vmatmul.msk.f32.vlgmr.msrb.gmra.mxu0 %vm746_vm3, %v757_v16 }
 0x297   : > { %v976_v18 = vsel %vm746_vm3, %v1482_v17, 0.0 }
 0x298   : > { %977 = vadd.xlane.f32.xlu2 %v976_v18 }
 0x29f   : > { %v1456_v19 = vpop.permute.xlu0 %1455 }
 0x2a0   : > { %v1457_v20 = vunpack.i.l.bf16 %v1456_v19  ;;  %v1458_v21 = vunpack.i.h.bf16 %v1456_v19 }
 0x2a2   : > { %854 = vmatpush.msra.mxu0 %v1457_v20 }
 0x2a4   : > { %855 = vmatpush.msra.mxu0 %v1458_v21 }
 0x2a9   : > { %1460 = vrot.lane.b32.xlu1 %v1454_v0, %s1832_s12  ;;  %s1725_s12 = sshra.s32 %s1095_s25, 4  ;;  %s1726_s12 = int_to_ptr.hbm [resolvable:$true] %s1725_s12 }
 0x2aa   : > { %s1727_s19 = scalar_lea.hbm %s1726_s12, 32  ;;  %p1732_p11 = scmp.lt.s32.totalorder %s1726_s12, %s2317_s8 }
 0x2ab   : > { %p1728_p4 = scmp.ne.s32.totalorder %s1726_s12, %s1727_s19  ;;  %p1733_p2 = scmp.lt.s32.totalorder %s1731_s26, %s1727_s19 }
 0x2ad   : > { %p1729_p7 = pnand %p1728_p4, %p1992_p3  ;;  %p1734_p10 = por %p1733_p2, %p1732_p11 }
 0x2af   : > { %p1730_p1 = pneg %p1729_p7 }
 0x2b0   : > { %1465 = vrot.lane.b32.xlu2 %v1454_v0, %s1834_s29 }
 0x2b1   : > { %p1735_p13 = pnand %p1734_p10, %p1730_p1 }
 0x2fb   : > { %v902_v22 = vpop.xlane.xlu2 %901 }
 0x2fc   : > { %1483 = vrcp.f32 %v902_v22 }
 0x302   : > { %v1484_v23 = vpop.eup %1483 }
 0x303   : > { %v824_v24 = vpop.xlane.xlu1 %823  ;;  %v904_v25 = vmul.f32 %v1484_v23, %v1476_v6 }
 0x304   : > { %1485 = vrcp.f32 %v824_v24 }
 0x305   : > { %1324 = vst.msk [vmem:[%s2178_s24 + $0x10] sm:$0xff] %vm746_vm3, %v904_v25 }
 0x30a   : > { %v1486_v26 = vpop.eup %1485 }
 0x30b   : > { %v826_v27 = vmul.f32 %v1486_v26, %v1478_v12  ;;  %v978_v28 = vpop.xlane.xlu2 %977 }
 0x30c   : > { %1487 = vrcp.f32 %v978_v28 }
 0x30d   : > { %1319 = vst.msk [vmem:[%s2178_s24 + $0x8] sm:$0xff] %vm746_vm3, %v826_v27  ;;  %1320 = vmatmul.msk.f32.vlgmr.msra.gmra.mxu0 %vm746_vm3, %v826_v27 }
 0x312   : > { %v1488_v29 = vpop.eup %1487 }
 0x313   : > { %v980_v30 = vmul.f32 %v1488_v29, %v1482_v17  ;;  %v1466_v31 = vpop.permute.xlu2 %1465  ;;  %v779_v37 = vpop.f32.mrf.mxu0 }
 0x314   : > { %v1467_v32 = vunpack.i.l.bf16 %v1466_v31  ;;  %v1468_v33 = vunpack.i.h.bf16 %v1466_v31 }
 0x315   : > { %1329 = vst.msk [vmem:[%s2178_s24 + $0x18] sm:$0xff] %vm746_vm3, %v980_v30 }
 0x316   : > { %1006 = vmatpush.msrb.mxu0 %v1467_v32 }
 0x318   : > { %1007 = vmatpush.msrb.mxu0 %v1468_v33 }
 0x319   : > { %1330 = vmatmul.msk.f32.vlgmr.msrb.gmra.mxu0 %vm746_vm3, %v980_v30 }
 0x31b   : > { %v1461_v34 = vpop.permute.xlu1 %1460 }
 0x31c   : > { %v1462_v35 = vunpack.i.l.bf16 %v1461_v34  ;;  %v1463_v36 = vunpack.i.h.bf16 %v1461_v34 }
 0x31e   : > { %930 = vmatpush.msrb.mxu2 %v1462_v35 }
 0x320   : > { %931 = vmatpush.msrb.mxu2 %v1463_v36 }
 0x321   : > { %1325 = vmatmul.msk.f32.vlgmr.msrb.gmra.mxu2 %vm746_vm3, %v904_v25 }
 0x38a   : > { %v857_v38 = vpop.f32.mrf.mxu0 }
 0x38b   : > { %1013 = vrot.lane.b32.xlu0 %v857_v38, %s1835_s4 }
 0x396   : > { %v1009_v39 = vpop.f32.mrf.mxu0 }
 0x397   : > { %1021 = vrot.lane.b32.xlu0 %v1009_v39, %s1836_s27 }
 0x3a4   : > { %v933_v40 = vpop.f32.mrf.mxu2 }
 0x3a5   : > { %1017 = vrot.lane.b32.xlu1 %v933_v40, %s1837_s16 }
 0x3fd   : > { %v1014_v45 = vpop.permute.xlu0 %1013 }
 0x3fe   : > { %v1024_v46 = vsel %vm714_vm1, %v779_v37, %v1014_v45 }
 0x409   : > { %v1022_v48 = vpop.permute.xlu0 %1021 }
 0x417   : > { %v1018_v47 = vpop.permute.xlu1 %1017 }
 0x418   : > { %v1025_v49 = vsel %vm746_vm3, %v1024_v46, %v1018_v47 }
 0x419   : > { %v1027_v50 = vsel %vm1026_vm4, %v1025_v49, %v1022_v48 }
 0x41a   : > { %1331 = vmatmul.msk.f32.vlgmr.msra.gmra.mxu1 %vm611_vm0, %v1027_v50 }
 0x41b   : > { %1738 = shalt.err (!%p1735_p13)
}
 0x41c   : > { %s1838_s21 = smov 128   ;;  %s1334_s24 = sshll.u32 %s1933_s15, 3 }
 0x41d   : > { %1365 = dma.vmem_to_hbm [thread:$0]  (%p1992_p3), %s1093_s11, 512, %s1095_s25, %s1066_s23, %s1838_s21, %s1838_s21, %s1835_s4  }
 0x41e   : > { %s2318_s0 = sld [smem:[#allocation38_spill]]  ;;  %s590_s29 = scalar_lea.vmem [#allocation16], %s1298_s6 }
 0x41f   : > { %s2320_s19 = sld [smem:[#allocation37_spill]]  ;;  %s1078_s20 = sshll.u32 %s590_s29, 4  ;;  %s1079_s20 = int_to_ptr.vmem [resolvable:$true] %s1078_s20 }
 0x420   : > { %s1061_s15 = scalar_lea.sflag [#allocation6], %s2093_s2 }
 0x424   : > { %s2319_s22 = smov %s2318_s0  ;;  %s1076_s28 = scalar_lea.hbm %s2318_s0, %s1334_s24 }
 0x425   : > { %v1472_v51 = vld [vmem:[%s2320_s19] ss:$0 sm:$0xff]  ;;  %s1080_s26 = sshll.u32 %s1076_s28, 4  ;;  %s1759_s6 = scalar_lea.hbm %s2319_s22, 16  ;;  %s1081_s26 = int_to_ptr.hbm [resolvable:$true] %s1080_s26 }
 0x426   : > { %s1753_s4 = sshra.s32 %s1081_s26, 4  ;;  %s1754_s4 = int_to_ptr.hbm [resolvable:$true] %s1753_s4 }
 0x427   : > { %s1755_s11 = scalar_lea.hbm %s1754_s4, 8  ;;  %p1760_p12 = scmp.lt.s32.totalorder %s1754_s4, %s2319_s22 }
 0x428   : > { %p1756_p0 = scmp.ne.s32.totalorder %s1754_s4, %s1755_s11  ;;  %p1761_p5 = scmp.lt.s32.totalorder %s1759_s6, %s1755_s11 }
 0x42a   : > { %p1757_p8 = pnand %p1756_p0, %p1992_p3  ;;  %p1762_p4 = por %p1761_p5, %p1760_p12 }
 0x42c   : > { %p1758_p9 = pneg %p1757_p8 }
 0x42e   : > { %p1763_p7 = pnand %p1762_p4, %p1758_p9 }
 0x497   : > { %v1056_v52 = vpop.f32.mrf.mxu1 }
 0x498   : > { %v1057_v53 = vadd.f32 %v1472_v51, %v1056_v52 }
 0x49a   : > { %1059 = vst.msk [vmem:[%s590_s29] sm:$0xff] %vm611_vm0, %v1057_v53 }
 0x49b   : > { %1766 = shalt.err (!%p1763_p7)
}
 0x49c   : > { %1364 = dma.vmem_to_hbm [thread:$0]  (%p1992_p3), %s1079_s20, 128, %s1081_s26, %s1061_s15  }
 0x49d PF: > { %s2321_s2 = sld [smem:[#allocation26_spill]]  ;;  %p2323_p1 = scmp.ge.s32.totalorder %s1823_s14, 2 }
 0x49f   : > { %p1392_p11 = pnand %p2323_p1, %p1947_p6 }
 0x4a1   : > { %p1393_p2 = pneg %p1392_p11 }
 0x4a3   : > { %s1109_s24 = sand.u32 1, %s2321_s2  }
 0x4a4   : > { %s1110_s27 = scalar_lea.sflag [#allocation6], %s1109_s24 }
 0x4a5   : > { %1802 = dma.done.wait (%p1393_p2), %s1110_s27, 128  }
 0x4a6   : > { %1804 = vsyncadd (%p1393_p2), %s1110_s27, 4294967168  ;;  %s1120_s16 = scalar_lea.sflag [#allocation18], %s1109_s24 }
 0x4a7   : > { %1806 = dma.done.wait (%p1393_p2), %s1120_s16, 512  }
 0x4a8   : > { %1808 = vsyncadd (%p1393_p2), %s1120_s16, 4294966784  ;;  %s2324_s14 = sld [smem:[#allocation29_spill]]  ;;  %s2327_s29 = smov %s1815_s30 }
 0x4a9   : > { %s2325_s0 = sld [smem:[#allocation27_spill]] }
 0x4aa   : > { %s2326_s13 = sld [smem:[#allocation31_spill]] }
 0x4ae   : > { %p43_p3 = scmp.ge.s32.totalorder %s2324_s14, 4  }
 0x4af   : > { %s2328_s30 = smov %s2325_s0 }
 0x4b0   : > { %s2329_s0 = smov %s2326_s13  ;;  %45 = sbr.rel (!%p43_p3) target bundleno = 24 (0x18), region = 169 }
 0x4b5   :  { %1126 = vsyncpa [#allocation5], 1 }
 0x4b6   :  { %1128 = vsyncpa [#allocation5 + $0x1], 1 }
 0x4b7   :  { %1129 = vsyncpa [#allocation8], 1 }
 0x4b8   :  { %1131 = vsyncpa [#allocation8 + $0x1], 1 }
 0x4b9   :  { %1132 = vsyncpa [#allocation11], 1 }
 0x4ba   :  { %1133 = vsyncpa [#allocation14], 1 }
 0x4bb   :  { %1134 = vsyncpa [#allocation6], 1 }
 0x4bc   :  { %1136 = vsyncpa [#allocation6 + $0x1], 1 }
 0x4bd   :  { %1137 = vsyncpa [#allocation18], 1 }
 0x4be   :  { %1139 = vsyncpa [#allocation18 + $0x1], 1 }

</bundles_post_ra>
